<compile_context>
chip_gen: v5e
topology: v5e:2x2
jax: 0.10.0
libtpu: 0.0.40
codegen_flags: <defaults>
</compile_context>

<pallas_src>
import functools

import jax
import jax.numpy as jnp
from jax.experimental import pallas as pl
from jax.experimental.pallas import tpu as pltpu


def _bpt_kernel(x_ref, lp_ref, ws_ref, wt_ref, bs_ref, bt_ref, z_ref, lp_out_ref):
    half = ws_ref.shape[0]

    x1 = x_ref[:, :half]                    # (tile, D/2) identity half
    x2 = x_ref[:, half:]                    # (tile, D/2) transformed half (read before z write)
    # TODO(synk): for large D with D/2 not a multiple of 128 these lane-offset
    # slices/stores become masked; zero-pad D/2 to 128n in the wrapper then.

    x1m = x1.astype(ws_ref.dtype)           # bf16 only when use_bf16_matmul

    # Coupling network: two lane-aligned matmuls (split weights) -> no lane
    # extraction of h at offset D/2.
    s = jnp.tanh(
        jnp.dot(x1m, ws_ref[...], preferred_element_type=jnp.float32) + bs_ref[...]
    )
    t = jnp.dot(x1m, wt_ref[...], preferred_element_type=jnp.float32) + bt_ref[...]

    # Fused "concat": identity half + transformed half written into one output.
    # TODO(synk): with a caller-donated x, alias x->z (input_output_aliases)
    # and write only the transformed half (~25% less HBM writeback).
    z_ref[:, :half] = x1
    z_ref[:, half:] = x2 * jnp.exp(s) + t

    # log|det J| = sum(s) per row, produced directly lane-major as (1, tile)
    # via an MXU contraction over the feature axis (same path as q @ k^T), so
    # the log_prob update is one unmasked lane-dense store per grid step.
    ones_row = jnp.ones((1, half), dtype=s.dtype)
    row_sum = jax.lax.dot_general(
        ones_row, s, (((1,), (1,)), ((), ())),
        preferred_element_type=jnp.float32,
    )                                        # (1, tile)
    lp_out_ref[...] = lp_ref[...] - row_sum


def _vmem_budget_bytes() -> int:
    """~3/4 of per-core VMEM: ~96 MiB on v5e/v6e (128 MiB), ~48 MiB on v7x (64 MiB)."""
    cap = 64 * 1024 * 1024
    try:
        cap = int(getattr(pltpu.get_tpu_info(), "vmem_capacity_bytes", cap))
    except Exception:
        pass
    budget = (cap // 4) * 3
    return max(32 * 1024 * 1024, min(budget, 100 * 1024 * 1024))


def _auto_tile_rows(n: int, d: int, vmem_budget: int) -> int:
    """Row tile: ~4 MiB of x per step, bounded by VMEM, >= ~8 grid steps at large N."""
    half = d // 2
    # Resident params (constant index_map, default double-buffered), f32.
    # TODO(synk): pl.Buffered(1) on the weight specs would halve this footprint.
    param_bytes = 2 * 2 * (half * half + half) * 4
    avail = max(vmem_budget - param_bytes - (2 << 20), 2 << 20)  # 2 MiB scratch headroom
    per_row = 2 * (2 * d * 4) + 2 * (2 * 4)        # x + z double-buffered, lp in/out
    rows_vmem = avail // per_row
    rows_target = max((4 << 20) // (4 * d), 1024)  # ~4 MiB of x payload per grid step
    tile = int(min(rows_vmem, rows_target))
    if n > 2048:                                    # keep >= ~8 steps (megacore + pipeline)
        tile = min(tile, max((n + 7) // 8, 256))
    tile = max((tile // 128) * 128, 128)            # lane-dense lp blocks + sublane align
    return n if tile >= n else tile


@functools.partial(jax.jit, static_argnames=("tile_rows", "use_bf16_matmul"))
def bi_prob_trans_forward(x, log_prob, w, b, *, tile_rows=None, use_bf16_matmul=False):
    """Forward pass of the BiProbTrans (affine-coupling instantiation).

    Args:
      x:        (N, D) float32, D even.
      log_prob: scalar or (N,) float32 — log probability before forward.
      w:        (D/2, D) float32 coupling-net weight ([W_s | W_t]).
      b:        (D,)     float32 coupling-net bias   ([b_s | b_t]).
      tile_rows: optional row-tile override (auto-sized from D and VMEM if None).
      use_bf16_matmul: cast x1/W to bf16 for the MXU (large-D compute-bound case).

    Returns:
      (z, log_prob_out) with z: (N, D), log_prob_out: (N,).
    """
    n, d = x.shape
    assert d % 2 == 0, "feature dim must be even for the coupling split"
    half = d // 2

    param_dtype = jnp.bfloat16 if use_bf16_matmul else jnp.float32
    # Zero-cost wrapper-side parameter split (weights, not activations).
    w_s = w[:, :half].astype(param_dtype)
    w_t = w[:, half:].astype(param_dtype)
    b_s = b[:half].reshape(1, half).astype(jnp.float32)
    b_t = b[half:].reshape(1, half).astype(jnp.float32)

    # log_prob as a lane-dense (1, N) row so per-tile stores are unmasked.
    lp = jnp.broadcast_to(jnp.asarray(log_prob, jnp.float32), (n,)).reshape(1, n)

    budget = _vmem_budget_bytes()
    tile = int(tile_rows) if tile_rows is not None else _auto_tile_rows(n, d, budget)
    if tile >= n:
        tile = n
    else:
        tile = max((tile // 128) * 128, 128)
        if tile >= n:
            tile = n
    grid = (pl.cdiv(n, tile),)

    cost = pl.CostEstimate(
        flops=2 * n * half * d + 2 * n * half,   # two coupling matmuls + row-sum contraction
        transcendentals=n * d,                   # tanh + exp, D/2 each per row
        bytes_accessed=int(4 * (2 * n * d + 2 * n + half * d + d)),
    )

    z, lp_out = pl.pallas_call(
        _bpt_kernel,
        out_shape=(
            jax.ShapeDtypeStruct((n, d), jnp.float32),
            jax.ShapeDtypeStruct((1, n), jnp.float32),
        ),
        grid=grid,
        in_specs=[
            pl.BlockSpec((tile, d), lambda i: (i, 0)),      # x      (row-tiled)
            pl.BlockSpec((1, tile), lambda i: (0, i)),      # lp     (lane-dense)
            pl.BlockSpec((half, half), lambda i: (0, 0)),   # W_s    (VMEM-resident)
            pl.BlockSpec((half, half), lambda i: (0, 0)),   # W_t    (VMEM-resident)
            pl.BlockSpec((1, half), lambda i: (0, 0)),      # b_s    (VMEM-resident)
            pl.BlockSpec((1, half), lambda i: (0, 0)),      # b_t    (VMEM-resident)
        ],
        out_specs=(
            pl.BlockSpec((tile, d), lambda i: (i, 0)),      # z      (row-tiled)
            pl.BlockSpec((1, tile), lambda i: (0, i)),      # lp_out (lane-dense)
        ),
        compiler_params=pltpu.CompilerParams(
            dimension_semantics=("parallel",),              # megacore sharding on v7x
            vmem_limit_bytes=budget,
        ),
        cost_estimate=cost,
    )(x, lp, w_s, w_t, b_s, b_t)

    return z, lp_out[0]


def _reference_forward(x, log_prob, w, b):
    """Pure-JAX reference (mirrors the PyTorch semantics)."""
    n, d = x.shape
    half = d // 2
    x1, x2 = x[:, :half], x[:, half:]
    h = x1 @ w + b
    s = jnp.tanh(h[:, :half])
    t = h[:, half:]
    z = jnp.concatenate([x1, x2 * jnp.exp(s) + t], axis=-1)
    lp = jnp.broadcast_to(jnp.asarray(log_prob, jnp.float32), (n,))
    return z, lp - jnp.sum(s, axis=-1)


if __name__ == "__main__":
    key = jax.random.PRNGKey(0)
    k_x, k_lp, k_w, k_b = jax.random.split(key, 4)

    N, D = 256, 32  # small; tile_rows=128 below exercises a 2-step row grid

    x = jax.random.normal(k_x, (N, D), dtype=jnp.float32)
    log_prob = jax.random.normal(k_lp, (N,), dtype=jnp.float32)

    # Deterministic parameter init (coupling net: Linear(D/2 -> D)).
    w = 0.1 * jax.random.normal(k_w, (D // 2, D), dtype=jnp.float32)
    b = 0.1 * jax.random.normal(k_b, (D,), dtype=jnp.float32)

    z, lp_out = bi_prob_trans_forward(x, log_prob, w, b, tile_rows=128)
    jax.block_until_ready((z, lp_out))

    z_ref, lp_ref = _reference_forward(x, log_prob, w, b)
    assert jnp.allclose(z, z_ref, atol=1e-5, rtol=1e-5)
    assert jnp.allclose(lp_out, lp_ref, atol=1e-5, rtol=1e-5)

    print("KERNEL_OK")
</pallas_src>

<mosaic_0001>
module attributes {stable_mosaic.version = 11 : i64} {
  func.func @_bpt_kernel(%arg0: i32, %arg1: memref<128x32xf32, #tpu.memory_space<vmem>>, %arg2: memref<1x128xf32, #tpu.memory_space<vmem>>, %arg3: memref<16x16xf32, #tpu.memory_space<vmem>>, %arg4: memref<16x16xf32, #tpu.memory_space<vmem>>, %arg5: memref<1x16xf32, #tpu.memory_space<vmem>>, %arg6: memref<1x16xf32, #tpu.memory_space<vmem>>, %arg7: memref<128x32xf32, #tpu.memory_space<vmem>>, %arg8: memref<1x128xf32, #tpu.memory_space<vmem>>) attributes {dimension_semantics = [#tpu.dimension_semantics<parallel>], iteration_bounds = array<i64: 2>, scalar_prefetch = 0 : i64, scratch_operands = 0 : i64, tpu.core_type = #tpu.core_type<tc>, window_params = [{transform_indices = @transform_0, window_bounds = array<i64: 128, 32>}, {transform_indices = @transform_1, window_bounds = array<i64: 1, 128>}, {pipeline_mode = #tpu.pipeline_mode<synchronous>, transform_indices = @transform_2, window_bounds = array<i64: 16, 16>}, {pipeline_mode = #tpu.pipeline_mode<synchronous>, transform_indices = @transform_3, window_bounds = array<i64: 16, 16>}, {pipeline_mode = #tpu.pipeline_mode<synchronous>, transform_indices = @transform_4, window_bounds = array<i64: 1, 16>}, {pipeline_mode = #tpu.pipeline_mode<synchronous>, transform_indices = @transform_5, window_bounds = array<i64: 1, 16>}, {transform_indices = @transform_6, window_bounds = array<i64: 128, 32>}, {transform_indices = @transform_7, window_bounds = array<i64: 1, 128>}]} {
    %c0 = arith.constant 0 : index
    %c0_0 = arith.constant 0 : index
    %0 = vector.load %arg1[%c0, %c0_0] : memref<128x32xf32, #tpu.memory_space<vmem>>, vector<128x16xf32>
    %c0_1 = arith.constant 0 : index
    %c16 = arith.constant 16 : index
    %1 = vector.load %arg1[%c0_1, %c16] : memref<128x32xf32, #tpu.memory_space<vmem>>, vector<128x16xf32>
    %c0_2 = arith.constant 0 : index
    %c0_3 = arith.constant 0 : index
    %2 = vector.load %arg3[%c0_2, %c0_3] : memref<16x16xf32, #tpu.memory_space<vmem>>, vector<16x16xf32>
    %cst = arith.constant dense<0.000000e+00> : vector<128x16xf32>
    %3 = tpu.matmul %0, %2, %cst {dimension_numbers = #tpu.dot_dimension_numbers<[1], [0], [0], [1], [0, 0, 1, 1], [], []>} : vector<128x16xf32>, vector<16x16xf32>, vector<128x16xf32> -> vector<128x16xf32>
    %c0_4 = arith.constant 0 : index
    %c0_5 = arith.constant 0 : index
    %4 = vector.load %arg5[%c0_4, %c0_5] : memref<1x16xf32, #tpu.memory_space<vmem>>, vector<1x16xf32>
    %5 = vector.broadcast %4 : vector<1x16xf32> to vector<128x16xf32>
    %6 = arith.addf %3, %5 : vector<128x16xf32>
    %7 = math.tanh %6 : vector<128x16xf32>
    %c0_6 = arith.constant 0 : index
    %c0_7 = arith.constant 0 : index
    %8 = vector.load %arg4[%c0_6, %c0_7] : memref<16x16xf32, #tpu.memory_space<vmem>>, vector<16x16xf32>
    %cst_8 = arith.constant dense<0.000000e+00> : vector<128x16xf32>
    %9 = tpu.matmul %0, %8, %cst_8 {dimension_numbers = #tpu.dot_dimension_numbers<[1], [0], [0], [1], [0, 0, 1, 1], [], []>} : vector<128x16xf32>, vector<16x16xf32>, vector<128x16xf32> -> vector<128x16xf32>
    %c0_9 = arith.constant 0 : index
    %c0_10 = arith.constant 0 : index
    %10 = vector.load %arg6[%c0_9, %c0_10] : memref<1x16xf32, #tpu.memory_space<vmem>>, vector<1x16xf32>
    %11 = vector.broadcast %10 : vector<1x16xf32> to vector<128x16xf32>
    %12 = arith.addf %9, %11 : vector<128x16xf32>
    %c0_11 = arith.constant 0 : index
    %c0_12 = arith.constant 0 : index
    %13 = vector.load %arg7[%c0_11, %c0_12] : memref<128x32xf32, #tpu.memory_space<vmem>>, vector<128x16xf32>
    tpu.vector_store %arg7[%c0_11, %c0_12], %0 {strides = array<i32>} : memref<128x32xf32, #tpu.memory_space<vmem>>, vector<128x16xf32>,
    %14 = math.exp %7 : vector<128x16xf32>
    %15 = arith.mulf %1, %14 : vector<128x16xf32>
    %16 = arith.addf %15, %12 : vector<128x16xf32>
    %c0_13 = arith.constant 0 : index
    %c16_14 = arith.constant 16 : index
    %17 = vector.load %arg7[%c0_13, %c16_14] : memref<128x32xf32, #tpu.memory_space<vmem>>, vector<128x16xf32>
    tpu.vector_store %arg7[%c0_13, %c16_14], %16 {strides = array<i32>} : memref<128x32xf32, #tpu.memory_space<vmem>>, vector<128x16xf32>,
    %cst_15 = arith.constant 1.000000e+00 : f32
    %18 = vector.broadcast %cst_15 : f32 to vector<1x16xf32>
    %cst_16 = arith.constant dense<0.000000e+00> : vector<1x128xf32>
    %19 = tpu.matmul %18, %7, %cst_16 {dimension_numbers = #tpu.dot_dimension_numbers<[1], [1], [0], [0], [0, 0, 1, 0], [], []>} : vector<1x16xf32>, vector<128x16xf32>, vector<1x128xf32> -> vector<1x128xf32>
    %c0_17 = arith.constant 0 : index
    %c0_18 = arith.constant 0 : index
    %20 = vector.load %arg2[%c0_17, %c0_18] : memref<1x128xf32, #tpu.memory_space<vmem>>, vector<1x128xf32>
    %21 = arith.subf %20, %19 : vector<1x128xf32>
    %c0_19 = arith.constant 0 : index
    %c0_20 = arith.constant 0 : index
    %22 = vector.load %arg8[%c0_19, %c0_20] : memref<1x128xf32, #tpu.memory_space<vmem>>, vector<1x128xf32>
    tpu.vector_store %arg8[%c0_19, %c0_20], %21 {strides = array<i32>} : memref<1x128xf32, #tpu.memory_space<vmem>>, vector<1x128xf32>,
    return
  }
  func.func @transform_0(%arg0: i32) -> (i32, i32) {
    %c0_i32 = arith.constant 0 : i32
    %c0_i32_0 = arith.constant 0 : i32
    return %arg0, %c0_i32 : i32, i32
  }
  func.func @transform_1(%arg0: i32) -> (i32, i32) {
    %c0_i32 = arith.constant 0 : i32
    %c0_i32_0 = arith.constant 0 : i32
    return %c0_i32, %arg0 : i32, i32
  }
  func.func @transform_2(%arg0: i32) -> (i32, i32) {
    %c0_i32 = arith.constant 0 : i32
    %c0_i32_0 = arith.constant 0 : i32
    %c0_i32_1 = arith.constant 0 : i32
    return %c0_i32, %c0_i32_0 : i32, i32
  }
  func.func @transform_3(%arg0: i32) -> (i32, i32) {
    %c0_i32 = arith.constant 0 : i32
    %c0_i32_0 = arith.constant 0 : i32
    %c0_i32_1 = arith.constant 0 : i32
    return %c0_i32, %c0_i32_0 : i32, i32
  }
  func.func @transform_4(%arg0: i32) -> (i32, i32) {
    %c0_i32 = arith.constant 0 : i32
    %c0_i32_0 = arith.constant 0 : i32
    %c0_i32_1 = arith.constant 0 : i32
    return %c0_i32, %c0_i32_0 : i32, i32
  }
  func.func @transform_5(%arg0: i32) -> (i32, i32) {
    %c0_i32 = arith.constant 0 : i32
    %c0_i32_0 = arith.constant 0 : i32
    %c0_i32_1 = arith.constant 0 : i32
    return %c0_i32, %c0_i32_0 : i32, i32
  }
  func.func @transform_6(%arg0: i32) -> (i32, i32) {
    %c0_i32 = arith.constant 0 : i32
    %c0_i32_0 = arith.constant 0 : i32
    return %arg0, %c0_i32 : i32, i32
  }
  func.func @transform_7(%arg0: i32) -> (i32, i32) {
    %c0_i32 = arith.constant 0 : i32
    %c0_i32_0 = arith.constant 0 : i32
    return %c0_i32, %arg0 : i32, i32
  }
}

</mosaic_0001>

<bundles_post_ra>
// kernel: bi_prob_trans_forward.1
= control target key start
LH: loop header
LB: loop body
LE: loop exit
PB: predicated region body
PF: predicated region fallthrough
CT: control target
= control target key end

     0   :  { %13 = vsyncpa [#allocation3], 0  ;;  %s1658_s0 = inlined_call_operand.vmem [shape: f32[256,32], index: 0, kind: input, shape index: {}]   ;;  %s1659_s1 = inlined_call_operand.vmem [shape: f32[1,256], index: 1, kind: input, shape index: {}]   ;;  %s1660_s2 = inlined_call_operand.vmem [shape: f32[16,16], index: 2, kind: input, shape index: {}]   ;;  %s1661_s3 = inlined_call_operand.vmem [shape: f32[16,16], index: 3, kind: input, shape index: {}]   ;;  %s1662_s4 = inlined_call_operand.vmem [shape: f32[1,16], index: 4, kind: input, shape index: {}]   ;;  %s1663_s5 = inlined_call_operand.vmem [shape: f32[1,16], index: 5, kind: input, shape index: {}]   ;;  %s1664_s6 = inlined_call_operand.vmem [shape: f32[256,32], index: 6, kind: output, shape index: {0}]   ;;  %s1665_s7 = inlined_call_operand.hbm [shape: f32[1,256], index: 7, kind: output, shape index: {1}]  }
   0x1   :  { %15 = vsyncpa [#allocation3 + $0x1], 0  ;;  %s1215_s24 = smov 0   ;;  %s1217_s25 = smov 0  }
   0x2   :  { %s1219_s26 = smov 0   ;;  %s1221_s27 = smov 0  }
   0x3 LB: > { %s1236_s28 = sadd.s32 4294967295, %s1171_s27   ;;  %s939_s29 = sadd.s32 4294967294, %s1171_s27   ;;  %s1171_s27 = sphi %s1221_s27, %s1671_s27   ;;  %s1167_s26 = sphi %s1219_s26, %s1670_s26   ;;  %s1163_s25 = sphi %s1217_s25, %s1669_s25   ;;  %s1159_s24 = sphi %s1215_s24, %s1668_s24  }
   0x4   : > { %s1240_s30 = sadd.s32 1, %s1171_s27   ;;  %s190_s8 = sadd.s32 1, %s1167_s26 }
   0x5   : > { %s187_s9 = ssub.s32 %s1171_s27, %s1240_s30  ;;  %p200_p0 = scmp.ne.s32.totalorder %s1167_s26, %s1163_s25 }
   0x6   : > { %p188_p1 = scmp.eq.s32.totalorder %s187_s9, 0  ;;  %p201_p2 = scmp.eq.s32.totalorder %s1236_s28, 1 }
   0x7   : > { %p206_p3 = scmp.ne.s32.totalorder %s1163_s25, %s1159_s24  ;;  %p207_p4 = scmp.eq.s32.totalorder %s939_s29, 1 }
   0x8   : > { %s1251_s10 = scalar_select %p188_p1, %s1167_s26, %s190_s8  }
   0x9   : > { %p1253_p5 = por %p201_p2, %p200_p0  ;;  %p1257_p6 = por %p207_p4, %p206_p3 }
   0xa   : > { %p942_p7 = scmp.ge.s32.totalorder %s1171_s27, 1  ;;  %p252_p8 = scmp.lt.s32.totalorder %s1171_s27, 3 }
   0xc   : > { %p253_p9 = pnand %p942_p7, %p252_p8 }
   0xd   : > { %s943_s19 = sshll.u32 (!%p253_p9), %s1236_s28, 4  ;;  %p297_p11 = scmp.lt.s32.totalorder (!%p253_p9), %s1236_s28, 1 }
   0xe   : > { %256 = sbr.rel (%p253_p9) target bundleno = 418 (0x1a2), region = 44  ;;  %p292_p10 = scmp.lt.s32.totalorder (!%p253_p9), %s943_s19, 31 }
   0xf   : > { %s289_s20 = sand.u32 (!%p253_p9), 1, %s1163_s25   ;;  %s846_s13 = scalar_lea.hbm (!%p253_p9), %s1665_s7, %s1236_s28 }
  0x10   : > { %s290_s15 = scalar_lea.vmem (!%p253_p9), [#allocation2], %s289_s20  ;;  %s850_s17 = sshll.u32 (!%p253_p9), %s846_s13, 4  ;;  %s851_s17 = int_to_ptr.hbm [resolvable:$true] %s850_s17 }
  0x11   : > { %s848_s16 = sshll.u32 (!%p253_p9), %s290_s15, 4  ;;  %s1123_s18 = sshra.s32 (!%p253_p9), %s851_s17, 4  ;;  %s849_s16 = int_to_ptr.vmem [resolvable:$true] %s848_s16  ;;  %s1124_s18 = int_to_ptr.hbm [resolvable:$true] %s1123_s18 }
  0x12   : > { %p1130_p1 = scmp.lt.s32.totalorder (!%p253_p9), %s1124_s18, %s1665_s7 }
  0x13   : > { %v323_v0 = vld [vmem:[%s1660_s2 + $0x8] sm:$0xff]  ;;  %v322_v2 = vld [vmem:[%s1660_s2] sm:$0xff]  ;;  %s1673_s19 = smov (!%p292_p10, %s943_s19), 31  ;;  %vm328_vm0 = vcmask 130048   ;;  %vm737_vm1 = vcmask 261248  }
  0x14   : > { %v459_v1 = vld [vmem:[%s1661_s3 + $0x8] sm:$0xff]  ;;  %391 = vmatpush.msra.mxu0 %v323_v0  ;;  %998 = vmatpush.msra.mxu3 %v323_v0  ;;  %v458_v3 = vld [vmem:[%s1661_s3] sm:$0xff]  ;;  %s944_s22 = sshll.u32 %s1673_s19, 3  ;;  %s1173_s19 = smov 16  }
  0x15   : > { %478 = vmatpush.msra.mxu1 %v459_v1  ;;  %s1279_s8 = scalar_lea.vmem %s1658_s0, %s944_s22  ;;  %s1284_s14 = scalar_lea.vmem %s1664_s6, %s944_s22  ;;  %v1449_v20 = vld [vmem:[%s1662_s4] ss:$0 sm:$0xff] }
  0x16   : > { %392 = vmatpush.msra.mxu0 %v322_v2  ;;  %999 = vmatpush.msra.mxu3 %v322_v2  ;;  %v1287_v4 = vld [vmem:[%s1279_s8] sm:$0xff]  ;;  %v1290_v5 = vld [vmem:[%s1279_s8 + $0x58] sm:$0xff]  ;;  %v1305_v6 = vld [vmem:[%s1279_s8 + $0x8] sm:$0xff]  ;;  %s298_s21 = scalar_select %p297_p11, %s1236_s28, 1 }
  0x17   : > { %479 = vmatpush.msra.mxu1 %v458_v3  ;;  %947 = vmatmul.msk.f32.vlgmr.msra.gmra.mxu0 %vm328_vm0, %v1287_v4  ;;  %529 = vst.msk [vmem:[%s1284_s14] sm:$0xff] %vm328_vm0, %v1287_v4  ;;  %v1311_v7 = vld [vmem:[%s1279_s8 + $0x60] sm:$0xff]  ;;  %v1317_v8 = vld [vmem:[%s1279_s8 + $0x10] sm:$0xff]  ;;  %v1323_v9 = vld [vmem:[%s1279_s8 + $0x68] sm:$0xff]  ;;  %s1129_s28 = scalar_lea.hbm %s1665_s7, 2 }
  0x18   : > { %1000 = vmatpush.msrb.mxu3 %v459_v1  ;;  %540 = vst.msk [vmem:[%s1284_s14 + $0x58] sm:$0xff] %vm328_vm0, %v1290_v5  ;;  %963 = vmatmul.msk.f32.vlgmr.msra.gmra.mxu1 %vm328_vm0, %v1287_v4  ;;  %v1329_v10 = vld [vmem:[%s1279_s8 + $0x18] sm:$0xff]  ;;  %v1335_v11 = vld [vmem:[%s1279_s8 + $0x70] sm:$0xff]  ;;  %v1341_v12 = vld [vmem:[%s1279_s8 + $0x20] sm:$0xff]  ;;  %s299_s29 = scalar_lea.vmem %s1659_s1, %s298_s21 }
  0x19   : > { %958 = vmatmul.msk.f32.vlgmr.msra.gmra.mxu3 %vm328_vm0, %v1290_v5  ;;  %530 = vst.msk [vmem:[%s1284_s14 + $0x8] sm:$0xff] %vm328_vm0, %v1305_v6  ;;  %v1351_v13 = vld [vmem:[%s1279_s8 + $0x78] sm:$0xff]  ;;  %v1359_v14 = vld [vmem:[%s1279_s8 + $0x28] sm:$0xff]  ;;  %v1365_v15 = vld [vmem:[%s1279_s8 + $0x30] sm:$0xff] }
  0x1a   : > { %1001 = vmatpush.msrb.mxu3 %v458_v3  ;;  %541 = vst.msk [vmem:[%s1284_s14 + $0x60] sm:$0xff] %vm328_vm0, %v1311_v7  ;;  %v1375_v16 = vld [vmem:[%s1279_s8 + $0x38] sm:$0xff]  ;;  %v1387_v17 = vld [vmem:[%s1279_s8 + $0x40] sm:$0xff]  ;;  %v1399_v18 = vld [vmem:[%s1279_s8 + $0x48] sm:$0xff] }
  0x1b   : > { %531 = vst.msk [vmem:[%s1284_s14 + $0x10] sm:$0xff] %vm328_vm0, %v1317_v8  ;;  %v1411_v19 = vld [vmem:[%s1279_s8 + $0x50] sm:$0xff]  ;;  %v1454_v21 = vld [vmem:[%s1663_s5] ss:$0 sm:$0xff] }
  0x1c   : > { %542 = vst.msk [vmem:[%s1284_s14 + $0x68] sm:$0xff] %vm328_vm0, %v1323_v9 }
  0x1d   : > { %532 = vst.msk [vmem:[%s1284_s14 + $0x18] sm:$0xff] %vm328_vm0, %v1329_v10 }
  0x1e   : > { %543 = vst.msk [vmem:[%s1284_s14 + $0x70] sm:$0xff] %vm328_vm0, %v1335_v11 }
  0x1f   : > { %948 = vmatmul.msk.f32.gmra.mxu0 %vm328_vm0, %v1305_v6  ;;  %533 = vst.msk [vmem:[%s1284_s14 + $0x20] sm:$0xff] %vm328_vm0, %v1341_v12 }
  0x20   : > { %964 = vmatmul.msk.f32.gmra.mxu1 %vm328_vm0, %v1305_v6  ;;  %544 = vst.msk [vmem:[%s1284_s14 + $0x78] sm:$0xff] %vm328_vm0, %v1351_v13 }
  0x21   : > { %959 = vmatmul.msk.f32.gmra.mxu3 %vm328_vm0, %v1311_v7  ;;  %534 = vst.msk [vmem:[%s1284_s14 + $0x28] sm:$0xff] %vm328_vm0, %v1359_v14 }
  0x22   : > { %535 = vst.msk [vmem:[%s1284_s14 + $0x30] sm:$0xff] %vm328_vm0, %v1365_v15 }
  0x23   : > { %536 = vst.msk [vmem:[%s1284_s14 + $0x38] sm:$0xff] %vm328_vm0, %v1375_v16 }
  0x24   : > { %537 = vst.msk [vmem:[%s1284_s14 + $0x40] sm:$0xff] %vm328_vm0, %v1387_v17 }
  0x25   : > { %538 = vst.msk [vmem:[%s1284_s14 + $0x48] sm:$0xff] %vm328_vm0, %v1399_v18 }
  0x26   : > { %539 = vst.msk [vmem:[%s1284_s14 + $0x50] sm:$0xff] %vm328_vm0, %v1411_v19 }
  0x27   : > { %949 = vmatmul.msk.f32.gmra.mxu0 %vm328_vm0, %v1317_v8 }
  0x28   : > { %965 = vmatmul.msk.f32.gmra.mxu1 %vm328_vm0, %v1317_v8 }
  0x29   : > { %960 = vmatmul.msk.f32.gmra.mxu3 %vm328_vm0, %v1323_v9 }
  0x2f   : > { %950 = vmatmul.msk.f32.gmra.mxu0 %vm328_vm0, %v1329_v10 }
  0x30   : > { %966 = vmatmul.msk.f32.gmra.mxu1 %vm328_vm0, %v1329_v10 }
  0x31   : > { %961 = vmatmul.msk.f32.gmra.mxu3 %vm328_vm0, %v1335_v11 }
  0x37   : > { %951 = vmatmul.msk.f32.gmra.mxu0 %vm328_vm0, %v1341_v12 }
  0x38   : > { %967 = vmatmul.msk.f32.gmra.mxu1 %vm328_vm0, %v1341_v12 }
  0x39   : > { %962 = vmatmul.msk.f32.gmra.mxu3 %vm328_vm0, %v1351_v13 }
  0x3f   : > { %952 = vmatmul.msk.f32.gmra.mxu0 %vm328_vm0, %v1359_v14 }
  0x40   : > { %968 = vmatmul.msk.f32.gmra.mxu1 %vm328_vm0, %v1359_v14 }
  0x41   : > { %974 = vmatmul.msk.f32.vlgmr.msrb.gmra.mxu3 %vm328_vm0, %v1290_v5 }
  0x47   : > { %953 = vmatmul.msk.f32.gmra.mxu0 %vm328_vm0, %v1365_v15 }
  0x48   : > { %969 = vmatmul.msk.f32.gmra.mxu1 %vm328_vm0, %v1365_v15 }
  0x49   : > { %975 = vmatmul.msk.f32.gmra.mxu3 %vm328_vm0, %v1311_v7 }
  0x4f   : > { %954 = vmatmul.msk.f32.gmra.mxu0 %vm328_vm0, %v1375_v16 }
  0x50   : > { %970 = vmatmul.msk.f32.gmra.mxu1 %vm328_vm0, %v1375_v16 }
  0x51   : > { %976 = vmatmul.msk.f32.gmra.mxu3 %vm328_vm0, %v1323_v9 }
  0x57   : > { %955 = vmatmul.msk.f32.gmra.mxu0 %vm328_vm0, %v1387_v17 }
  0x58   : > { %971 = vmatmul.msk.f32.gmra.mxu1 %vm328_vm0, %v1387_v17 }
  0x59   : > { %977 = vmatmul.msk.f32.gmra.mxu3 %vm328_vm0, %v1335_v11 }
  0x5f   : > { %956 = vmatmul.msk.f32.gmra.mxu0 %vm328_vm0, %v1399_v18 }
  0x60   : > { %972 = vmatmul.msk.f32.gmra.mxu1 %vm328_vm0, %v1399_v18 }
  0x61   : > { %978 = vmatmul.msk.f32.gmra.mxu3 %vm328_vm0, %v1351_v13 }
  0x67   : > { %957 = vmatmul.msk.f32.gmra.mxu0 %vm328_vm0, %v1411_v19 }
  0x68   : > { %973 = vmatmul.msk.f32.gmra.mxu1 %vm328_vm0, %v1411_v19 }
  0x94   : > { %v394_v22 = vpop.f32.mrf.mxu0 }
  0x95   : > { %v395_v23 = vadd.f32 %v1449_v20, %v394_v22  ;;  %v481_v24 = vpop.f32.mrf.mxu1 }
  0x96   : > { %v482_v25 = vadd.f32 %v1454_v21, %v481_v24 }
  0x97   : > { %1045 = vtanh.f32 %v395_v23 }
  0x98   : > { %673 = vrot.lane.b32.xlu1 %v482_v25, %s1173_s19 }
  0x9c   : > { %v427_v26 = vpop.f32.mrf.mxu3  ;;  %v397_v28 = vpop.f32.mrf.mxu0 }
  0x9d   : > { %v428_v27 = vadd.f32 %v1449_v20, %v427_v26  ;;  %v1460_v29 = vpop.eup %1045  ;;  %v484_v30 = vpop.f32.mrf.mxu1  ;;  %v398_v31 = vadd.f32 %v1449_v20, %v397_v28 }
  0x9e   : > { %v485_v32 = vadd.f32 %v1454_v21, %v484_v30  ;;  %v545_v33 = vmul.f32 1.442695, %v1460_v29 }
  0x9f   : > { %1047 = vtanh.f32 %v428_v27 }
  0xa0   : > { %1049 = vpow2.f32 %v545_v33  ;;  %675 = vrot.lane.b32.xlu2 %v485_v32, %s1173_s19 }
  0xa1   : > { %1051 = vtanh.f32 %v398_v31 }
  0xa4   : > { %v430_v34 = vpop.f32.mrf.mxu3  ;;  %v400_v37 = vpop.f32.mrf.mxu0 }
  0xa5   : > { %v1466_v35 = vpop.eup %1047  ;;  %v431_v38 = vadd.f32 %v1449_v20, %v430_v34  ;;  %v401_v39 = vadd.f32 %v1449_v20, %v400_v37  ;;  %v487_v40 = vpop.f32.mrf.mxu1 }
  0xa6   : > { %v567_v36 = vmul.f32 1.442695, %v1466_v35  ;;  %v1050_v41 = vpop.eup %1049  ;;  %v488_v45 = vadd.f32 %v1454_v21, %v487_v40 }
  0xa7   : > { %593 = vrot.lane.b32.xlu0 %v1050_v41, %s1173_s19  ;;  %v1472_v42 = vpop.eup %1051 }
  0xa8   : > { %1053 = vpow2.f32 %v567_v36  ;;  %v547_v44 = vmul.f32 1.442695, %v1472_v42 }
  0xa9   : > { %1055 = vtanh.f32 %v401_v39 }
  0xaa   : > { %1057 = vtanh.f32 %v431_v38 }
  0xac   : > { %v433_v43 = vpop.f32.mrf.mxu3  ;;  %v403_v48 = vpop.f32.mrf.mxu0 }
  0xad   : > { %v434_v46 = vadd.f32 %v1449_v20, %v433_v43  ;;  %v490_v50 = vpop.f32.mrf.mxu1  ;;  %v404_v54 = vadd.f32 %v1449_v20, %v403_v48 }
  0xae   : > { %v1054_v47 = vpop.eup %1053  ;;  %v491_v52 = vadd.f32 %v1454_v21, %v490_v50 }
  0xaf   : > { %v1477_v49 = vpop.eup %1055  ;;  %1059 = vtanh.f32 %v434_v46  ;;  %615 = vrot.lane.b32.xlu2 %v1054_v47, %s1173_s19  ;;  %677 = vrot.lane.b32.xlu0 %v488_v45, %s1173_s19 }
  0xb0   : > { %v549_v51 = vmul.f32 1.442695, %v1477_v49  ;;  %v1482_v53 = vpop.eup %1057  ;;  %1061 = vpow2.f32 %v547_v44  ;;  %679 = vrot.lane.b32.xlu1 %v491_v52, %s1173_s19 }
  0xb1   : > { %v569_v55 = vmul.f32 1.442695, %v1482_v53 }
  0xb2   : > { %1063 = vpow2.f32 %v549_v51 }
  0xb3   : > { %1065 = vtanh.f32 %v404_v54 }
  0xb4   : > { %v436_v56 = vpop.f32.mrf.mxu3  ;;  %v406_v60 = vpop.f32.mrf.mxu0 }
  0xb5   : > { %v1060_v57 = vpop.eup %1059  ;;  %v437_v58 = vadd.f32 %v1449_v20, %v436_v56  ;;  %v407_v62 = vadd.f32 %v1449_v20, %v406_v60  ;;  %v493_v63 = vpop.f32.mrf.mxu1 }
  0xb6   : > { %v571_v59 = vmul.f32 1.442695, %v1060_v57  ;;  %v1062_v61 = vpop.eup %1061  ;;  %v494_v1 = vadd.f32 %v1454_v21, %v493_v63 }
  0xb7   : > { %1067 = vtanh.f32 %v437_v58  ;;  %595 = vrot.lane.b32.xlu0 %v1062_v61, %s1173_s19 }
  0xb8   : > { %v1064_v0 = vpop.eup %1063  ;;  %1069 = vpow2.f32 %v569_v55  ;;  %681 = vrot.lane.b32.xlu2 %v494_v1, %s1173_s19 }
  0xb9   : > { %1071 = vpow2.f32 %v571_v59  ;;  %597 = vrot.lane.b32.xlu1 %v1064_v0, %s1173_s19  ;;  %v1494_v2 = vpop.eup %1065 }
  0xba   : > { %1073 = vtanh.f32 %v407_v62  ;;  %v551_v25 = vmul.f32 1.442695, %v1494_v2 }
  0xbc   : > { %v439_v3 = vpop.f32.mrf.mxu3  ;;  %v409_v27 = vpop.f32.mrf.mxu0 }
  0xbd   : > { %v1068_v22 = vpop.eup %1067  ;;  %v440_v23 = vadd.f32 %v1449_v20, %v439_v3  ;;  %v410_v30 = vadd.f32 %v1449_v20, %v409_v27  ;;  %v496_v31 = vpop.f32.mrf.mxu1 }
  0xbe   : > { %v1070_v24 = vpop.eup %1069  ;;  %v573_v26 = vmul.f32 1.442695, %v1068_v22  ;;  %v497_v36 = vadd.f32 %v1454_v21, %v496_v31 }
  0xbf   : > { %v1072_v28 = vpop.eup %1071  ;;  %1075 = vtanh.f32 %v440_v23  ;;  %617 = vrot.lane.b32.xlu0 %v1070_v24, %s1173_s19 }
  0xc0   : > { %1077 = vpow2.f32 %v573_v26  ;;  %v1499_v32 = vpop.eup %1073 }
  0xc1   : > { %1079 = vpow2.f32 %v551_v25  ;;  %619 = vrot.lane.b32.xlu1 %v1072_v28, %s1173_s19  ;;  %v553_v33 = vmul.f32 1.442695, %v1499_v32 }
  0xc2   : > { %1081 = vtanh.f32 %v410_v30 }
  0xc3   : > { %1083 = vpow2.f32 %v553_v33 }
  0xc4   : > { %v412_v38 = vpop.f32.mrf.mxu0  ;;  %v514_v44 = vpop.f32.mrf.mxu3 }
  0xc5   : > { %v1076_v34 = vpop.eup %1075  ;;  %v413_v39 = vadd.f32 %v1449_v20, %v412_v38  ;;  %v499_v40 = vpop.f32.mrf.mxu1  ;;  %v515_v47 = vadd.f32 %v1454_v21, %v514_v44 }
  0xc6   : > { %v1078_v37 = vpop.eup %1077  ;;  %979 = vmatpush.xpose.msk.msra.mxu2 %vm328_vm0, %v1076_v34  ;;  %v575_v45 = vmul.f32 1.442695, %v1076_v34  ;;  %v500_v51 = vadd.f32 %v1454_v21, %v499_v40 }
  0xc7   : > { %621 = vrot.lane.b32.xlu2 %v1078_v37, %s1173_s19  ;;  %v1080_v41 = vpop.eup %1079  ;;  %683 = vrot.lane.b32.xlu0 %v497_v36, %s1173_s19  ;;  %1085 = vtanh.f32 %v413_v39 }
  0xc8   : > { %v1508_v43 = vpop.eup %1081  ;;  %1087 = vpow2.f32 %v575_v45 }
  0xc9   : > { %599 = vrot.lane.b32.xlu1 %v1080_v41, %s1173_s19  ;;  %v555_v46 = vmul.f32 1.442695, %v1508_v43  ;;  %v1084_v48 = vpop.eup %1083 }
  0xca   : > { %980 = vmatpush.xpose.msk.msra.mxu2 %vm328_vm0, %v1068_v22 }
  0xcb   : > { %1089 = vpow2.f32 %v555_v46 }
  0xcc   : > { %v415_v50 = vpop.f32.mrf.mxu0  ;;  %v517_v56 = vpop.f32.mrf.mxu3 }
  0xcd   : > { %v416_v52 = vadd.f32 %v1449_v20, %v415_v50  ;;  %v502_v54 = vpop.f32.mrf.mxu1  ;;  %v1519_v55 = vpop.eup %1085  ;;  %v518_v61 = vadd.f32 %v1454_v21, %v517_v56 }
  0xce   : > { %981 = vmatpush.xpose.msk.msra.mxu2 %vm328_vm0, %v1060_v57  ;;  %v557_v57 = vmul.f32 1.442695, %v1519_v55  ;;  %v1088_v58 = vpop.eup %1087 }
  0xcf   : > { %601 = vrot.lane.b32.xlu2 %v1084_v48, %s1173_s19  ;;  %1091 = vtanh.f32 %v416_v52  ;;  %695 = vrot.lane.b32.xlu0 %v515_v47, %s1173_s19 }
  0xd0   : > { %1093 = vpow2.f32 %v557_v57 }
  0xd1   : > { %685 = vrot.lane.b32.xlu1 %v500_v51, %s1173_s19  ;;  %v1090_v59 = vpop.eup %1089 }
  0xd2   : > { %982 = vmatpush.xpose.msk.msra.mxu2 %vm328_vm0, %v1482_v53  ;;  %v503_v53 = vadd.f32 %v1454_v21, %v502_v54 }
  0xd4   : > { %v418_v60 = vpop.f32.mrf.mxu0  ;;  %v520_v31 = vpop.f32.mrf.mxu3 }
  0xd5   : > { %v1092_v62 = vpop.eup %1091  ;;  %v419_v63 = vadd.f32 %v1449_v20, %v418_v60  ;;  %v505_v0 = vpop.f32.mrf.mxu1 }
  0xd6   : > { %983 = vmatpush.xpose.msk.msra.mxu2 %vm328_vm0, %v1466_v35  ;;  %v559_v1 = vmul.f32 1.442695, %v1092_v62  ;;  %v1094_v3 = vpop.eup %1093  ;;  %v506_v27 = vadd.f32 %v1454_v21, %v505_v0 }
  0xd7   : > { %603 = vrot.lane.b32.xlu2 %v1090_v59, %s1173_s19  ;;  %1095 = vtanh.f32 %v419_v63  ;;  %623 = vrot.lane.b32.xlu0 %v1088_v58, %s1173_s19 }
  0xd8   : > { %1097 = vpow2.f32 %v559_v1 }
  0xd9   : > { %697 = vrot.lane.b32.xlu1 %v518_v61, %s1173_s19 }
  0xdc   : > { %v421_v22 = vpop.f32.mrf.mxu0  ;;  %v523_v45 = vpop.f32.mrf.mxu3 }
  0xdd   : > { %v1096_v23 = vpop.eup %1095  ;;  %v422_v35 = vadd.f32 %v1449_v20, %v421_v22  ;;  %v508_v26 = vpop.f32.mrf.mxu1  ;;  %v524_v46 = vadd.f32 %v1454_v21, %v523_v45 }
  0xde   : > { %v1098_v24 = vpop.eup %1097  ;;  %v561_v25 = vmul.f32 1.442695, %v1096_v23  ;;  %v509_v30 = vadd.f32 %v1454_v21, %v508_v26 }
  0xdf   : > { %687 = vrot.lane.b32.xlu2 %v503_v53, %s1173_s19  ;;  %1099 = vtanh.f32 %v422_v35  ;;  %605 = vrot.lane.b32.xlu0 %v1094_v3, %s1173_s19 }
  0xe0   : > { %1101 = vpow2.f32 %v561_v25 }
  0xe1   : > { %607 = vrot.lane.b32.xlu1 %v1098_v24, %s1173_s19 }
  0xe4   : > { %v424_v28 = vpop.f32.mrf.mxu0  ;;  %v526_v48 = vpop.f32.mrf.mxu3 }
  0xe5   : > { %v1100_v33 = vpop.eup %1099  ;;  %v425_v34 = vadd.f32 %v1449_v20, %v424_v28  ;;  %v511_v38 = vpop.f32.mrf.mxu1  ;;  %v521_v20 = vadd.f32 %v1454_v21, %v520_v31  ;;  %v527_v50 = vadd.f32 %v1454_v21, %v526_v48 }
  0xe6   : > { %v1102_v36 = vpop.eup %1101  ;;  %v563_v37 = vmul.f32 1.442695, %v1100_v33  ;;  %v512_v39 = vadd.f32 %v1454_v21, %v511_v38 }
  0xe7   : > { %1103 = vtanh.f32 %v425_v34  ;;  %609 = vrot.lane.b32.xlu2 %v1102_v36, %s1173_s19  ;;  %689 = vrot.lane.b32.xlu0 %v506_v27, %s1173_s19 }
  0xe8   : > { %1105 = vpow2.f32 %v563_v37 }
  0xe9   : > { %691 = vrot.lane.b32.xlu1 %v509_v30, %s1173_s19 }
  0xed   : > { %v1104_v40 = vpop.eup %1103 }
  0xee   : > { %v1106_v41 = vpop.eup %1105  ;;  %v565_v44 = vmul.f32 1.442695, %v1104_v40  ;;  %984 = vmatpush.xpose.msk.msra.mxu2 %vm328_vm0, %v1104_v40 }
  0xef   : > { %693 = vrot.lane.b32.xlu2 %v512_v39, %s1173_s19  ;;  %611 = vrot.lane.b32.xlu0 %v1106_v41, %s1173_s19 }
  0xf0   : > { %1107 = vpow2.f32 %v565_v44 }
  0xf2   : > { %985 = vmatpush.xpose.msk.msra.mxu2 %vm328_vm0, %v1100_v33 }
  0xf6   : > { %v1108_v47 = vpop.eup %1107  ;;  %986 = vmatpush.xpose.msk.msra.mxu2 %vm328_vm0, %v1096_v23 }
  0xf7   : > { %699 = vrot.lane.b32.xlu2 %v521_v20, %s1173_s19  ;;  %613 = vrot.lane.b32.xlu1 %v1108_v47, %s1173_s19 }
  0xf8   : > { %701 = vrot.lane.b32.xlu0 %v524_v46, %s1173_s19 }
  0xfa   : > { %987 = vmatpush.xpose.msk.msra.mxu2 %vm328_vm0, %v1092_v62  ;;  %v676_v51 = vpop.permute.xlu2 %675 }
  0xfe   : > { %988 = vmatpush.xpose.msk.msra.mxu2 %vm328_vm0, %v1519_v55  ;;  %v1174_v55 = vmov 1.0  }
  0xff   : > { %703 = vrot.lane.b32.xlu1 %v527_v50, %s1173_s19  ;;  %s1125_s19 = scalar_lea.hbm %s1124_s18, 1 }
 0x100   : > { %p1126_p12 = scmp.ne.s32.totalorder %s1124_s18, %s1125_s19  ;;  %p1131_p2 = scmp.lt.s32.totalorder %s1129_s28, %s1125_s19 }
 0x102   : > { %989 = vmatpush.xpose.msk.msra.mxu2 %vm328_vm0, %v1508_v43  ;;  %p1127_p13 = pnand %p1126_p12, %p1253_p5  ;;  %p1132_p3 = por %p1131_p2, %p1130_p1 }
 0x104   : > { %p1128_p0 = pneg %p1127_p13 }
 0x106   : > { %990 = vmatpush.xpose.msk.msra.mxu2 %vm328_vm0, %v1499_v32  ;;  %p1133_p4 = pnand %p1132_p3, %p1128_p0 }
 0x109   : > { %v616_v52 = vpop.permute.xlu2 %615 }
 0x10a   : > { %991 = vmatpush.xpose.msk.msra.mxu2 %vm328_vm0, %v1494_v2  ;;  %v674_v54 = vpop.permute.xlu1 %673  ;;  %v652_v24 = vmul.f32 %v616_v52, %v1290_v5 }
 0x10e   : > { %992 = vmatpush.xpose.msk.msra.mxu2 %vm328_vm0, %v1477_v49 }
 0x112   : > { %993 = vmatpush.xpose.msk.msra.mxu2 %vm328_vm0, %v1472_v42  ;;  %v682_v21 = vpop.permute.xlu2 %681 }
 0x116   : > { %994 = vmatpush.xpose.msk.msra.mxu2 %vm328_vm0, %v1460_v29 }
 0x119   : > { %995 = vmatmul.msk.f32.vlgmr.msra.gmra.mxu2 %vm328_vm0, %v1174_v55  ;;  %v594_v32 = vpop.permute.xlu0 %593 }
 0x11a   : > { %v641_v43 = vmul.f32 %v594_v32, %v1287_v4 }
 0x11c   : > { %v721_v2 = vadd.f32 %v674_v54, %v641_v43 }
 0x11e   : > { %738 = vst.msk [vmem:[%s1284_s14] sm:$0xff] %vm737_vm1, %v721_v2 }
 0x121   : > { %v622_v49 = vpop.permute.xlu2 %621  ;;  %v678_v42 = vpop.permute.xlu0 %677 }
 0x122   : > { %v680_v56 = vpop.permute.xlu1 %679  ;;  %v655_v47 = vmul.f32 %v622_v49, %v1335_v11  ;;  %v825_v11 = vld [vmem:[%s299_s29] sm:$0x1] }
 0x129   : > { %v602_v57 = vpop.permute.xlu2 %601  ;;  %v596_v58 = vpop.permute.xlu0 %595 }
 0x12a   : > { %v645_v29 = vmul.f32 %v602_v57, %v1341_v12  ;;  %v642_v61 = vmul.f32 %v596_v58, %v1305_v6 }
 0x12b   : > { %v598_v60 = vpop.permute.xlu1 %597 }
 0x12c   : > { %v725_v59 = vadd.f32 %v682_v21, %v645_v29  ;;  %v643_v4 = vmul.f32 %v598_v60, %v1317_v8  ;;  %v722_v62 = vadd.f32 %v676_v51, %v642_v61 }
 0x12e   : > { %742 = vst.msk [vmem:[%s1284_s14 + $0x20] sm:$0xff] %vm737_vm1, %v725_v59  ;;  %v723_v63 = vadd.f32 %v678_v42, %v643_v4 }
 0x12f   : > { %739 = vst.msk [vmem:[%s1284_s14 + $0x8] sm:$0xff] %vm737_vm1, %v722_v62 }
 0x130   : > { %740 = vst.msk [vmem:[%s1284_s14 + $0x10] sm:$0xff] %vm737_vm1, %v723_v63 }
 0x131   : > { %v604_v0 = vpop.permute.xlu2 %603  ;;  %v618_v1 = vpop.permute.xlu0 %617 }
 0x132   : > { %v646_v3 = vmul.f32 %v604_v0, %v1359_v14  ;;  %v653_v14 = vmul.f32 %v618_v1, %v1311_v7 }
 0x133   : > { %v620_v12 = vpop.permute.xlu1 %619 }
 0x134   : > { %v654_v5 = vmul.f32 %v620_v12, %v1323_v9 }
 0x139   : > { %v688_v53 = vpop.permute.xlu2 %687  ;;  %v684_v6 = vpop.permute.xlu0 %683 }
 0x13a   : > { %v726_v23 = vadd.f32 %v684_v6, %v646_v3 }
 0x13b   : > { %v600_v22 = vpop.permute.xlu1 %599 }
 0x13c   : > { %v644_v8 = vmul.f32 %v600_v22, %v1329_v10  ;;  %743 = vst.msk [vmem:[%s1284_s14 + $0x28] sm:$0xff] %vm737_vm1, %v726_v23 }
 0x13e   : > { %v724_v35 = vadd.f32 %v680_v56, %v644_v8 }
 0x140   : > { %741 = vst.msk [vmem:[%s1284_s14 + $0x18] sm:$0xff] %vm737_vm1, %v724_v35 }
 0x141   : > { %v610_v25 = vpop.permute.xlu2 %609  ;;  %v696_v26 = vpop.permute.xlu0 %695 }
 0x142   : > { %v732_v28 = vadd.f32 %v696_v26, %v652_v24  ;;  %v649_v9 = vmul.f32 %v610_v25, %v1387_v17 }
 0x143   : > { %v686_v27 = vpop.permute.xlu1 %685 }
 0x144   : > { %749 = vst.msk [vmem:[%s1284_s14 + $0x58] sm:$0xff] %vm737_vm1, %v732_v28 }
 0x149   : > { %v694_v30 = vpop.permute.xlu2 %693  ;;  %v624_v10 = vpop.permute.xlu0 %623 }
 0x14b   : > { %v698_v31 = vpop.permute.xlu1 %697 }
 0x14c   : > { %v733_v33 = vadd.f32 %v698_v31, %v653_v14 }
 0x14e   : > { %750 = vst.msk [vmem:[%s1284_s14 + $0x60] sm:$0xff] %vm737_vm1, %v733_v33 }
 0x151   : > { %v700_v34 = vpop.permute.xlu2 %699  ;;  %v606_v36 = vpop.permute.xlu0 %605 }
 0x152   : > { %v734_v37 = vadd.f32 %v700_v34, %v654_v5  ;;  %v647_v39 = vmul.f32 %v606_v36, %v1365_v15 }
 0x153   : > { %v608_v38 = vpop.permute.xlu1 %607 }
 0x154   : > { %v648_v7 = vmul.f32 %v608_v38, %v1375_v16  ;;  %751 = vst.msk [vmem:[%s1284_s14 + $0x68] sm:$0xff] %vm737_vm1, %v734_v37  ;;  %v727_v40 = vadd.f32 %v686_v27, %v647_v39 }
 0x156   : > { %v728_v41 = vadd.f32 %v688_v53, %v648_v7  ;;  %744 = vst.msk [vmem:[%s1284_s14 + $0x30] sm:$0xff] %vm737_vm1, %v727_v40 }
 0x158   : > { %745 = vst.msk [vmem:[%s1284_s14 + $0x38] sm:$0xff] %vm737_vm1, %v728_v41 }
 0x159   : > { %v690_v44 = vpop.permute.xlu0 %689 }
 0x15a   : > { %v729_v45 = vadd.f32 %v690_v44, %v649_v9 }
 0x15b   : > { %v692_v20 = vpop.permute.xlu1 %691 }
 0x15c   : > { %746 = vst.msk [vmem:[%s1284_s14 + $0x40] sm:$0xff] %vm737_vm1, %v729_v45 }
 0x161   : > { %v612_v15 = vpop.permute.xlu0 %611 }
 0x162   : > { %v650_v16 = vmul.f32 %v612_v15, %v1399_v18  ;;  %v656_v18 = vmul.f32 %v624_v10, %v1351_v13 }
 0x164   : > { %v730_v46 = vadd.f32 %v692_v20, %v650_v16 }
 0x166   : > { %747 = vst.msk [vmem:[%s1284_s14 + $0x48] sm:$0xff] %vm737_vm1, %v730_v46 }
 0x169   : > { %v614_v17 = vpop.permute.xlu1 %613 }
 0x16a   : > { %v651_v48 = vmul.f32 %v614_v17, %v1411_v19  ;;  %v702_v50 = vpop.permute.xlu0 %701 }
 0x16b   : > { %v735_v51 = vadd.f32 %v702_v50, %v655_v47 }
 0x16c   : > { %v731_v52 = vadd.f32 %v694_v30, %v651_v48 }
 0x16d   : > { %752 = vst.msk [vmem:[%s1284_s14 + $0x70] sm:$0xff] %vm737_vm1, %v735_v51 }
 0x16e   : > { %748 = vst.msk [vmem:[%s1284_s14 + $0x50] sm:$0xff] %vm737_vm1, %v731_v52 }
 0x171   : > { %v704_v21 = vpop.permute.xlu1 %703 }
 0x172   : > { %v736_v54 = vadd.f32 %v704_v21, %v656_v18 }
 0x174   : > { %753 = vst.msk [vmem:[%s1284_s14 + $0x78] sm:$0xff] %vm737_vm1, %v736_v54  ;;  %s834_s14 = scalar_lea.sflag [#allocation3], %s289_s20 }
 0x19c   : > { %v822_v13 = vpop.f32.mrf.mxu2 }
 0x19d   : > { %v826_v19 = vsub.f32 %v825_v11, %v822_v13 }
 0x19f   : > { %827 = vst [vmem:[%s290_s15] sm:$0x1] %v826_v19 }
 0x1a0   : > { %1136 = shalt.err (!%p1133_p4)
}
 0x1a1   : > { %1002 = dma.vmem_to_hbm [thread:$0]  (%p1253_p5), %s849_s16, 16, %s851_s17, %s834_s14  }
 0x1a2 PF: > { %p1008_p7 = scmp.ge.s32.totalorder %s1171_s27, 2  ;;  %s870_s20 = sand.u32 1, %s1159_s24  }
 0x1a3   : > { %s871_s8 = scalar_lea.sflag [#allocation3], %s870_s20 }
 0x1a4   : > { %p1005_p8 = pnand %p1008_p7, %p1257_p6 }
 0x1a6   : > { %p1006_p9 = pneg %p1005_p8 }
 0x1a8   : > { %1154 = dma.done.wait (%p1006_p9), %s871_s8, 16  }
 0x1a9   : > { %1156 = vsyncadd (%p1006_p9), %s871_s8, 4294967280  ;;  %p18_p10 = scmp.ge.s32.totalorder %s1240_s30, 4   ;;  %s1668_s24 = smov %s1163_s25 }
 0x1aa   : > { %s1669_s25 = smov %s1167_s26  ;;  %s1670_s26 = smov %s1251_s10 }
 0x1ab   : > { %s1671_s27 = smov %s1240_s30  ;;  %20 = sbr.rel (!%p18_p10) target bundleno = 3 (0x3), region = 94 }
 0x1b0   :  { %876 = vsyncpa [#allocation3], 1 }
 0x1b1   :  { %878 = vsyncpa [#allocation3 + $0x1], 1 }

</bundles_post_ra>
